<compile_context>
chip_gen: v7x
topology: tpu7x:2x2x1
jax: 0.10.0
libtpu: 0.0.40
codegen_flags: <defaults>
</compile_context>

<pallas_src>
import functools

import jax
import jax.numpy as jnp
from jax.experimental import pallas as pl
from jax.experimental.pallas import tpu as pltpu

KERNEL_SIZE = 3   # TCNModel default
NUM_LEVELS = 2    # TCNModel default


def _ceil_to(a, m):
    return ((a + m - 1) // m) * m


# --------------------------------------------------------------------------
# Kernel
# --------------------------------------------------------------------------
def tcn_kernel(x_ref,
               w1_ref, b1_ref, w12_ref, b12_ref,
               w21_ref, b21_ref, w22_ref, b22_ref,
               wf_ref, bf_ref,
               out_ref, y2_scr,
               *, T, last_t, K, GH):
    """One grid step processes a (block_graphs/G * T, G*C_in) slab."""
    x = x_ref[...]                                       # (M, G*Cin) f32
    M = x.shape[0]
    t_local = jax.lax.broadcasted_iota(jnp.int32, (M, 1), 0) % T

    # Hoisted causal masks (s=2 is shared by dilation-1 tap-2 and
    # dilation-2 tap-1); JAX does not CSE these across conv() calls.
    shifts = sorted({m * d for d in (1, 2) for m in range(1, K)})
    masks = {s: t_local >= s for s in shifts}

    def im2col(h, dilation):
        """(M, C) -> (M, K*C) bf16 causal im2col (roll + zero-fill)."""
        cols = [h]
        for m in range(1, K):                            # static unroll (K=3)
            s = m * dilation
            shifted = pltpu.roll(h, shift=s, axis=0)     # row r <- row r-s (XLU)
            cols.append(jnp.where(masks[s], shifted, 0.0))
        return jnp.concatenate(cols, axis=1).astype(jnp.bfloat16)

    def conv(h, w_ref, b_ref, dilation):
        return jnp.dot(im2col(h, dilation), w_ref[...],
                       preferred_element_type=jnp.float32) + b_ref[...]

    # ---- TemporalBlock 1 (dilation=1); dropout = identity (eval mode) ----
    # conv11 and the 1x1 downsample are fused into one matmul: W1 = [w11 | wd1]
    hr = conv(x, w1_ref, b1_ref, 1)                      # (M, 2*GH)
    h = jnp.maximum(hr[:, :GH], 0.0)
    res = hr[:, GH:]
    h = jnp.maximum(conv(h, w12_ref, b12_ref, 1), 0.0)
    y1 = jnp.maximum(h + res, 0.0)

    # ---- TemporalBlock 2 (dilation=2); identity residual ----
    h = jnp.maximum(conv(y1, w21_ref, b21_ref, 2), 0.0)
    h = jnp.maximum(conv(h, w22_ref, b22_ref, 2), 0.0)
    y2_scr[...] = jnp.maximum(h + y1, 0.0)

    # ---- final Linear on the last ORIGINAL timestep of each graph ----
    # Strided sublane read from scratch (plain vld) instead of reshape +
    # dynamic index on a value (which would need sublane-gather/relayout).
    last = y2_scr[pl.ds(last_t, M // T, stride=T), :]    # (Bg, GH)
    out_ref[...] = jnp.dot(last.astype(jnp.bfloat16), wf_ref[...],
                           preferred_element_type=jnp.float32) + bf_ref[...]


# --------------------------------------------------------------------------
# Wrapper
# --------------------------------------------------------------------------
def tcn_forward(x_seq, kparams, *, block_graphs=512):
    """x_seq: (B, T, C_in) float32  ->  (B, prediction_horizon*3) float32."""
    B, T, C_in = x_seq.shape
    G = kparams["G"]
    K = kparams["kernel_size"]
    H = kparams["hidden_dim"]
    GH = G * H
    out_pp = kparams["out_pp"]
    out_dim = kparams["out_dim"]
    GOUT = G * out_pp

    # Pad time to a sublane multiple (zeros at the END is safe for causal
    # convs; the FC still reads the last *original* timestep).
    T_pad = _ceil_to(T, 8)

    # Choose the per-step graph block.  Bt is a multiple of 8*G when tiled so
    # every block dim stays (8,128)-friendly; when the batch fits in <=1 block
    # but is large enough, split into 2 grid steps so both v7x TensorCores get
    # work ("parallel" grid axis).
    align = 8 * G
    B_req = _ceil_to(B, G)
    if B_req <= block_graphs:
        if B_req >= 2 * align:
            Bt = _ceil_to(-(-B_req // 2), align)
            B_pad = 2 * Bt
        else:
            Bt = B_req
            B_pad = B_req
    else:
        Bt = _ceil_to(min(block_graphs, B_req), align)
        B_pad = _ceil_to(B_req, Bt)

    if B_pad != B or T_pad != T:
        x_seq = jnp.pad(x_seq, ((0, B_pad - B), (0, T_pad - T), (0, 0)))

    Bg = Bt // G                       # super-graphs (packed groups) per step
    SG = B_pad // G                    # total super-graphs
    M = Bg * T_pad                     # rows per grid step

    # Pack G graphs along lanes: row = (super_graph, t), lane = (g, channel).
    x_packed = (x_seq.reshape(SG, G, T_pad, C_in)
                .transpose(0, 2, 1, 3)
                .reshape(SG * T_pad, G * C_in))

    weight_order = ["w1", "b1", "w12", "b12", "w21", "b21", "w22", "b22",
                    "wf", "bf"]
    weights = [kparams[k] for k in weight_order]

    in_specs = [pl.BlockSpec((M, G * C_in), lambda i: (i, 0))]
    for w in weights:                                    # all weights are 2-D
        in_specs.append(pl.BlockSpec(tuple(int(s) for s in w.shape),
                                     lambda i: (0, 0)))

    num_steps = B_pad // Bt
    KGC = K * G * C_in
    KGH = K * GH
    flops = num_steps * (2 * M * KGC * (2 * GH)          # fused conv11 + down
                         + 3 * (2 * M * KGH * GH)        # conv12/conv21/conv22
                         + 2 * Bg * GH * GOUT)           # final fc
    bytes_accessed = (int(x_packed.size) * 4 + SG * GOUT * 4
                      + sum(int(w.size) * w.dtype.itemsize for w in weights))

    kernel = functools.partial(tcn_kernel, T=T_pad, last_t=T - 1, K=K, GH=GH)

    out = pl.pallas_call(
        kernel,
        out_shape=jax.ShapeDtypeStruct((SG, GOUT), jnp.float32),
        grid_spec=pltpu.PrefetchScalarGridSpec(
            num_scalar_prefetch=0,
            grid=(num_steps,),
            in_specs=in_specs,
            out_specs=pl.BlockSpec((Bg, GOUT), lambda i: (i, 0)),
            scratch_shapes=[pltpu.VMEM((M, GH), jnp.float32)],
        ),
        compiler_params=pltpu.CompilerParams(
            dimension_semantics=("parallel",),
            vmem_limit_bytes=32 * 1024 * 1024),
        cost_estimate=pl.CostEstimate(
            flops=flops, transcendentals=0, bytes_accessed=bytes_accessed),
    )(x_packed, *weights)

    # (SG, G*out_pp) -> (B_pad, out_pp): row sg, lane block g == graph sg*G+g.
    out = out.reshape(B_pad, out_pp)
    return out[:B, :out_dim]


# --------------------------------------------------------------------------
# Parameter construction / conversion
# --------------------------------------------------------------------------
def init_torch_params(key, in_channels, hidden_dim, prediction_horizon,
                      kernel_size=KERNEL_SIZE):
    """Deterministic synthetic parameters in PyTorch Conv1d / Linear layout."""
    out_dim = prediction_horizon * 3
    ks = jax.random.split(key, 12)

    def conv_w(k, out_ch, in_ch, ksz):
        return jax.random.normal(k, (out_ch, in_ch, ksz), jnp.float32) * 0.1

    def vec(k, n):
        return jax.random.normal(k, (n,), jnp.float32) * 0.1

    return {
        "conv11_w": conv_w(ks[0], hidden_dim, in_channels, kernel_size),
        "conv11_b": vec(ks[1], hidden_dim),
        "conv12_w": conv_w(ks[2], hidden_dim, hidden_dim, kernel_size),
        "conv12_b": vec(ks[3], hidden_dim),
        "down1_w": conv_w(ks[4], hidden_dim, in_channels, 1),
        "down1_b": vec(ks[5], hidden_dim),
        "conv21_w": conv_w(ks[6], hidden_dim, hidden_dim, kernel_size),
        "conv21_b": vec(ks[7], hidden_dim),
        "conv22_w": conv_w(ks[8], hidden_dim, hidden_dim, kernel_size),
        "conv22_b": vec(ks[9], hidden_dim),
        "fc_w": jax.random.normal(ks[10], (out_dim, hidden_dim), jnp.float32) * 0.1,
        "fc_b": vec(ks[11], out_dim),
    }


def _block_diag(w, G):
    """(Cin, Cout) -> (G*Cin, G*Cout) graph-major block-diagonal."""
    eye = jnp.eye(G, dtype=w.dtype)
    out = jnp.einsum("ab,co->acbo", eye, w)              # (G, Cin, G, Cout)
    return out.reshape(G * w.shape[0], G * w.shape[1])


def prepare_kernel_params(p, kernel_size=KERNEL_SIZE):
    """PyTorch-layout params -> packed block-diagonal matmul layout.

    Conv1d weight (Cout, Cin, K): tap m holds weight[:, :, K-1-m].T so
    y[t] = sum_m x[t - m*d] @ W[tap m].  Each tap is made block-diagonal over
    the G graphs packed on the lane axis; conv11 and the 1x1 downsample are
    fused into one (K*G*Cin, 2*G*H) matrix.
    """
    K = kernel_size
    H, C_in, _ = p["conv11_w"].shape
    out_dim = p["fc_w"].shape[0]

    # Graphs packed along lanes so G*H == 128 (lane-dense activations).
    G = 128 // H if (H <= 128 and 128 % H == 0) else 1
    out_pp = _ceil_to(out_dim, max(1, 128 // G))         # G*out_pp % 128 == 0

    def conv_packed(w):
        taps = jnp.transpose(w[:, :, ::-1], (2, 1, 0))   # (K, Cin, Cout)
        blocks = [_block_diag(taps[m], G) for m in range(w.shape[2])]
        return jnp.concatenate(blocks, axis=0).astype(jnp.bfloat16)

    def bias_packed(b, pad_to=None):
        v = b.astype(jnp.float32).reshape(1, -1)
        if pad_to is not None and pad_to > v.shape[1]:
            v = jnp.pad(v, ((0, 0), (0, pad_to - v.shape[1])))
        return jnp.tile(v, (1, G))

    # Fused first conv + 1x1 downsample (downsample lives in the tap-0 rows).
    w11p = conv_packed(p["conv11_w"])                     # (K*G*Cin, G*H)
    wd1p = _block_diag(p["down1_w"][:, :, 0].T, G)        # (G*Cin, G*H)
    wd1p = jnp.pad(wd1p, ((0, (K - 1) * G * C_in), (0, 0))).astype(jnp.bfloat16)
    w1 = jnp.concatenate([w11p, wd1p], axis=1)            # (K*G*Cin, 2*G*H)
    b1 = jnp.concatenate([bias_packed(p["conv11_b"]),
                          bias_packed(p["down1_b"])], axis=1)

    wf_pg = jnp.pad(p["fc_w"].T, ((0, 0), (0, out_pp - out_dim)))  # (H, out_pp)
    wf = _block_diag(wf_pg, G).astype(jnp.bfloat16)        # (G*H, G*out_pp)
    bf = bias_packed(p["fc_b"], pad_to=out_pp)

    return {
        "w1": w1, "b1": b1,
        "w12": conv_packed(p["conv12_w"]), "b12": bias_packed(p["conv12_b"]),
        "w21": conv_packed(p["conv21_w"]), "b21": bias_packed(p["conv21_b"]),
        "w22": conv_packed(p["conv22_w"]), "b22": bias_packed(p["conv22_b"]),
        "wf": wf, "bf": bf,
        "G": G, "out_pp": out_pp, "out_dim": out_dim,
        "kernel_size": K, "hidden_dim": H,
    }


# --------------------------------------------------------------------------
# Plain-JAX glue + reference (PyTorch semantics, f32)
# --------------------------------------------------------------------------
def gather_embeddings_by_time(x, batch, node_time, num_graphs, seq_len):
    """Mirrors TCNModel._gather_embeddings_by_time (scatter glue, outside kernel)."""
    x_seq = jnp.zeros((num_graphs, seq_len, x.shape[1]), x.dtype)
    return x_seq.at[batch, node_time].set(x)


def tcn_reference(x_seq, p, kernel_size=KERNEL_SIZE):
    """Pure-JAX f32 reference implementing Conv1d+Chomp1d+TemporalBlock+fc."""
    K = kernel_size

    def causal_conv(x, w, b, dilation):
        T = x.shape[1]
        pad = (K - 1) * dilation
        xp = jnp.pad(x, ((0, 0), (pad, 0), (0, 0)))
        y = jnp.zeros(x.shape[:2] + (w.shape[0],), jnp.float32)
        for k in range(K):
            off = k * dilation
            y = y + jnp.einsum("btc,oc->bto", xp[:, off:off + T, :], w[:, :, k])
        return y + b

    relu = jax.nn.relu
    h = relu(causal_conv(x_seq, p["conv11_w"], p["conv11_b"], 1))
    h = relu(causal_conv(h, p["conv12_w"], p["conv12_b"], 1))
    res = jnp.einsum("btc,oc->bto", x_seq, p["down1_w"][:, :, 0]) + p["down1_b"]
    y1 = relu(h + res)
    h = relu(causal_conv(y1, p["conv21_w"], p["conv21_b"], 2))
    h = relu(causal_conv(h, p["conv22_w"], p["conv22_b"], 2))
    y2 = relu(h + y1)
    return y2[:, -1, :] @ p["fc_w"].T + p["fc_b"]


# --------------------------------------------------------------------------
if __name__ == "__main__":
    in_channels = 4
    hidden_dim = 32
    prediction_horizon = 2          # out_dim = 6
    num_graphs = 8
    seq_len = 8
    num_nodes = num_graphs * seq_len

    key = jax.random.PRNGKey(0)
    k_x, k_p = jax.random.split(key)

    x = jax.random.normal(k_x, (num_nodes, in_channels), jnp.float32)
    batch = jnp.repeat(jnp.arange(num_graphs, dtype=jnp.int32), seq_len)
    node_time = jnp.tile(jnp.arange(seq_len, dtype=jnp.int32), num_graphs)
    edge_index = jnp.zeros((2, 0), jnp.int32)   # ignored (API compatibility)

    torch_params = init_torch_params(k_p, in_channels, hidden_dim,
                                     prediction_horizon)
    kparams = prepare_kernel_params(torch_params)

    # 1) gather node features into (num_graphs, seq_len, in_channels)   (glue)
    x_seq = gather_embeddings_by_time(x, batch, node_time, num_graphs, seq_len)
    # 2-3) fused TCN (2 temporal blocks) + last-step FC in one Pallas kernel
    out = tcn_forward(x_seq, kparams)
    out = jax.block_until_ready(out)

    ref = tcn_reference(x_seq, torch_params)
    assert out.shape == (num_graphs, prediction_horizon * 3)
    assert bool(jnp.all(jnp.isfinite(out)))
    err = float(jnp.max(jnp.abs(out - ref)))
    assert bool(jnp.allclose(out, ref, rtol=5e-2, atol=5e-2)), err
    print("KERNEL_OK")
</pallas_src>

<mosaic_0001>
module attributes {stable_mosaic.version = 11 : i64} {
  func.func @tcn_kernel(%arg0: i32, %arg1: memref<16x16xf32, #tpu.memory_space<vmem>>, %arg2: memref<48x256xbf16, #tpu.memory_space<vmem>>, %arg3: memref<1x256xf32, #tpu.memory_space<vmem>>, %arg4: memref<384x128xbf16, #tpu.memory_space<vmem>>, %arg5: memref<1x128xf32, #tpu.memory_space<vmem>>, %arg6: memref<384x128xbf16, #tpu.memory_space<vmem>>, %arg7: memref<1x128xf32, #tpu.memory_space<vmem>>, %arg8: memref<384x128xbf16, #tpu.memory_space<vmem>>, %arg9: memref<1x128xf32, #tpu.memory_space<vmem>>, %arg10: memref<128x128xbf16, #tpu.memory_space<vmem>>, %arg11: memref<1x128xf32, #tpu.memory_space<vmem>>, %arg12: memref<2x128xf32, #tpu.memory_space<vmem>>, %arg13: memref<16x128xf32, #tpu.memory_space<vmem>>) attributes {dimension_semantics = [#tpu.dimension_semantics<parallel>], iteration_bounds = array<i64: 1>, scalar_prefetch = 0 : i64, scratch_operands = 1 : i64, tpu.core_type = #tpu.core_type<tc>, window_params = [{transform_indices = @transform_0, window_bounds = array<i64: 16, 16>}, {pipeline_mode = #tpu.pipeline_mode<synchronous>, transform_indices = @transform_1, window_bounds = array<i64: 48, 256>}, {pipeline_mode = #tpu.pipeline_mode<synchronous>, transform_indices = @transform_2, window_bounds = array<i64: 1, 256>}, {pipeline_mode = #tpu.pipeline_mode<synchronous>, transform_indices = @transform_3, window_bounds = array<i64: 384, 128>}, {pipeline_mode = #tpu.pipeline_mode<synchronous>, transform_indices = @transform_4, window_bounds = array<i64: 1, 128>}, {pipeline_mode = #tpu.pipeline_mode<synchronous>, transform_indices = @transform_5, window_bounds = array<i64: 384, 128>}, {pipeline_mode = #tpu.pipeline_mode<synchronous>, transform_indices = @transform_6, window_bounds = array<i64: 1, 128>}, {pipeline_mode = #tpu.pipeline_mode<synchronous>, transform_indices = @transform_7, window_bounds = array<i64: 384, 128>}, {pipeline_mode = #tpu.pipeline_mode<synchronous>, transform_indices = @transform_8, window_bounds = array<i64: 1, 128>}, {pipeline_mode = #tpu.pipeline_mode<synchronous>, transform_indices = @transform_9, window_bounds = array<i64: 128, 128>}, {pipeline_mode = #tpu.pipeline_mode<synchronous>, transform_indices = @transform_10, window_bounds = array<i64: 1, 128>}, {transform_indices = @transform_11, window_bounds = array<i64: 2, 128>}]} {
    %c0 = arith.constant 0 : index
    %c0_0 = arith.constant 0 : index
    %0 = vector.load %arg1[%c0, %c0_0] : memref<16x16xf32, #tpu.memory_space<vmem>>, vector<16x16xf32>
    %1 = tpu.iota {dimensions = array<i32: 0>} : vector<16x1xi32>
    %c8_i32 = arith.constant 8 : i32
    %c0_i32 = arith.constant 0 : i32
    %2 = arith.cmpi eq, %c8_i32, %c0_i32 : i32
    %c1_i32 = arith.constant 1 : i32
    %3 = arith.select %2, %c1_i32, %c8_i32 : i32
    %4 = vector.broadcast %3 : i32 to vector<16x1xi32>
    %5 = arith.remsi %1, %4 : vector<16x1xi32>
    %c0_i32_1 = arith.constant 0 : i32
    %6 = vector.broadcast %c0_i32_1 : i32 to vector<16x1xi32>
    %7 = arith.cmpi ne, %5, %6 : vector<16x1xi32>
    %c0_i32_2 = arith.constant 0 : i32
    %8 = vector.broadcast %c0_i32_2 : i32 to vector<16x1xi32>
    %9 = arith.cmpi slt, %5, %8 : vector<16x1xi32>
    %c0_i32_3 = arith.constant 0 : i32
    %10 = arith.cmpi slt, %3, %c0_i32_3 : i32
    %11 = vector.broadcast %10 : i1 to vector<16x1xi1>
    %12 = vector.broadcast %11 : vector<16x1xi1> to vector<16x1xi1>
    %13 = arith.xori %9, %12 : vector<16x1xi1>
    %14 = arith.andi %13, %7 : vector<16x1xi1>
    %15 = vector.broadcast %3 : i32 to vector<16x1xi32>
    %16 = arith.addi %5, %15 : vector<16x1xi32>
    %17 = arith.select %14, %16, %5 : vector<16x1xi1>, vector<16x1xi32>
    %c1_i32_4 = arith.constant 1 : i32
    %18 = vector.broadcast %c1_i32_4 : i32 to vector<16x1xi32>
    %19 = arith.cmpi sge, %17, %18 : vector<16x1xi32>
    %c2_i32 = arith.constant 2 : i32
    %20 = vector.broadcast %c2_i32 : i32 to vector<16x1xi32>
    %21 = arith.cmpi sge, %17, %20 : vector<16x1xi32>
    %c4_i32 = arith.constant 4 : i32
    %22 = vector.broadcast %c4_i32 : i32 to vector<16x1xi32>
    %23 = arith.cmpi sge, %17, %22 : vector<16x1xi32>
    %c1_i32_5 = arith.constant 1 : i32
    %24 = tpu.dynamic_rotate %0 by %c1_i32_5 dim 0 : vector<16x16xf32>, i32 -> vector<16x16xf32>
    %cst = arith.constant 0.000000e+00 : f32
    %25 = vector.shape_cast %19 : vector<16x1xi1> to vector<16x1xi1>
    %26 = vector.broadcast %25 : vector<16x1xi1> to vector<16x16xi1>
    %27 = vector.broadcast %cst : f32 to vector<16x16xf32>
    %28 = arith.select %26, %24, %27 : vector<16x16xi1>, vector<16x16xf32>
    %c2_i32_6 = arith.constant 2 : i32
    %29 = tpu.dynamic_rotate %0 by %c2_i32_6 dim 0 : vector<16x16xf32>, i32 -> vector<16x16xf32>
    %cst_7 = arith.constant 0.000000e+00 : f32
    %30 = vector.shape_cast %21 : vector<16x1xi1> to vector<16x1xi1>
    %31 = vector.broadcast %30 : vector<16x1xi1> to vector<16x16xi1>
    %32 = vector.broadcast %cst_7 : f32 to vector<16x16xf32>
    %33 = arith.select %31, %29, %32 : vector<16x16xi1>, vector<16x16xf32>
    %34 = tpu.concatenate %0, %28, %33 in 1 : vector<16x16xf32>, vector<16x16xf32>, vector<16x16xf32> -> vector<16x48xf32>
    %35 = arith.truncf %34 : vector<16x48xf32> to vector<16x48xbf16>
    %c0_8 = arith.constant 0 : index
    %c0_9 = arith.constant 0 : index
    %36 = vector.load %arg2[%c0_8, %c0_9] : memref<48x256xbf16, #tpu.memory_space<vmem>>, vector<48x256xbf16>
    %cst_10 = arith.constant dense<0.000000e+00> : vector<16x256xf32>
    %37 = tpu.matmul %35, %36, %cst_10 {dimension_numbers = #tpu.dot_dimension_numbers<[1], [0], [0], [1], [0, 0, 1, 1], [], []>} : vector<16x48xbf16>, vector<48x256xbf16>, vector<16x256xf32> -> vector<16x256xf32>
    %c0_11 = arith.constant 0 : index
    %c0_12 = arith.constant 0 : index
    %38 = vector.load %arg3[%c0_11, %c0_12] : memref<1x256xf32, #tpu.memory_space<vmem>>, vector<1x256xf32>
    %39 = vector.broadcast %38 : vector<1x256xf32> to vector<16x256xf32>
    %40 = arith.addf %37, %39 : vector<16x256xf32>
    %41 = vector.extract_strided_slice %40 {offsets = [0, 0], sizes = [16, 128], strides = [1, 1]} : vector<16x256xf32> to vector<16x128xf32>
    %cst_13 = arith.constant 0.000000e+00 : f32
    %42 = vector.broadcast %cst_13 : f32 to vector<16x128xf32>
    %43 = arith.maximumf %41, %42 : vector<16x128xf32>
    %44 = vector.extract_strided_slice %40 {offsets = [0, 128], sizes = [16, 128], strides = [1, 1]} : vector<16x256xf32> to vector<16x128xf32>
    %c1_i32_14 = arith.constant 1 : i32
    %45 = tpu.dynamic_rotate %43 by %c1_i32_14 dim 0 : vector<16x128xf32>, i32 -> vector<16x128xf32>
    %cst_15 = arith.constant 0.000000e+00 : f32
    %46 = vector.shape_cast %19 : vector<16x1xi1> to vector<16x1xi1>
    %47 = vector.broadcast %46 : vector<16x1xi1> to vector<16x128xi1>
    %48 = vector.broadcast %cst_15 : f32 to vector<16x128xf32>
    %49 = arith.select %47, %45, %48 : vector<16x128xi1>, vector<16x128xf32>
    %c2_i32_16 = arith.constant 2 : i32
    %50 = tpu.dynamic_rotate %43 by %c2_i32_16 dim 0 : vector<16x128xf32>, i32 -> vector<16x128xf32>
    %cst_17 = arith.constant 0.000000e+00 : f32
    %51 = vector.shape_cast %21 : vector<16x1xi1> to vector<16x1xi1>
    %52 = vector.broadcast %51 : vector<16x1xi1> to vector<16x128xi1>
    %53 = vector.broadcast %cst_17 : f32 to vector<16x128xf32>
    %54 = arith.select %52, %50, %53 : vector<16x128xi1>, vector<16x128xf32>
    %55 = tpu.concatenate %43, %49, %54 in 1 : vector<16x128xf32>, vector<16x128xf32>, vector<16x128xf32> -> vector<16x384xf32>
    %56 = arith.truncf %55 : vector<16x384xf32> to vector<16x384xbf16>
    %c0_18 = arith.constant 0 : index
    %c0_19 = arith.constant 0 : index
    %57 = vector.load %arg4[%c0_18, %c0_19] : memref<384x128xbf16, #tpu.memory_space<vmem>>, vector<384x128xbf16>
    %cst_20 = arith.constant dense<0.000000e+00> : vector<16x128xf32>
    %58 = tpu.matmul %56, %57, %cst_20 {dimension_numbers = #tpu.dot_dimension_numbers<[1], [0], [0], [1], [0, 0, 1, 1], [], []>} : vector<16x384xbf16>, vector<384x128xbf16>, vector<16x128xf32> -> vector<16x128xf32>
    %c0_21 = arith.constant 0 : index
    %c0_22 = arith.constant 0 : index
    %59 = vector.load %arg5[%c0_21, %c0_22] : memref<1x128xf32, #tpu.memory_space<vmem>>, vector<1x128xf32>
    %60 = vector.broadcast %59 : vector<1x128xf32> to vector<16x128xf32>
    %61 = arith.addf %58, %60 : vector<16x128xf32>
    %cst_23 = arith.constant 0.000000e+00 : f32
    %62 = vector.broadcast %cst_23 : f32 to vector<16x128xf32>
    %63 = arith.maximumf %61, %62 : vector<16x128xf32>
    %64 = arith.addf %63, %44 : vector<16x128xf32>
    %cst_24 = arith.constant 0.000000e+00 : f32
    %65 = vector.broadcast %cst_24 : f32 to vector<16x128xf32>
    %66 = arith.maximumf %64, %65 : vector<16x128xf32>
    %c2_i32_25 = arith.constant 2 : i32
    %67 = tpu.dynamic_rotate %66 by %c2_i32_25 dim 0 : vector<16x128xf32>, i32 -> vector<16x128xf32>
    %cst_26 = arith.constant 0.000000e+00 : f32
    %68 = vector.shape_cast %21 : vector<16x1xi1> to vector<16x1xi1>
    %69 = vector.broadcast %68 : vector<16x1xi1> to vector<16x128xi1>
    %70 = vector.broadcast %cst_26 : f32 to vector<16x128xf32>
    %71 = arith.select %69, %67, %70 : vector<16x128xi1>, vector<16x128xf32>
    %c4_i32_27 = arith.constant 4 : i32
    %72 = tpu.dynamic_rotate %66 by %c4_i32_27 dim 0 : vector<16x128xf32>, i32 -> vector<16x128xf32>
    %cst_28 = arith.constant 0.000000e+00 : f32
    %73 = vector.shape_cast %23 : vector<16x1xi1> to vector<16x1xi1>
    %74 = vector.broadcast %73 : vector<16x1xi1> to vector<16x128xi1>
    %75 = vector.broadcast %cst_28 : f32 to vector<16x128xf32>
    %76 = arith.select %74, %72, %75 : vector<16x128xi1>, vector<16x128xf32>
    %77 = tpu.concatenate %66, %71, %76 in 1 : vector<16x128xf32>, vector<16x128xf32>, vector<16x128xf32> -> vector<16x384xf32>
    %78 = arith.truncf %77 : vector<16x384xf32> to vector<16x384xbf16>
    %c0_29 = arith.constant 0 : index
    %c0_30 = arith.constant 0 : index
    %79 = vector.load %arg6[%c0_29, %c0_30] : memref<384x128xbf16, #tpu.memory_space<vmem>>, vector<384x128xbf16>
    %cst_31 = arith.constant dense<0.000000e+00> : vector<16x128xf32>
    %80 = tpu.matmul %78, %79, %cst_31 {dimension_numbers = #tpu.dot_dimension_numbers<[1], [0], [0], [1], [0, 0, 1, 1], [], []>} : vector<16x384xbf16>, vector<384x128xbf16>, vector<16x128xf32> -> vector<16x128xf32>
    %c0_32 = arith.constant 0 : index
    %c0_33 = arith.constant 0 : index
    %81 = vector.load %arg7[%c0_32, %c0_33] : memref<1x128xf32, #tpu.memory_space<vmem>>, vector<1x128xf32>
    %82 = vector.broadcast %81 : vector<1x128xf32> to vector<16x128xf32>
    %83 = arith.addf %80, %82 : vector<16x128xf32>
    %cst_34 = arith.constant 0.000000e+00 : f32
    %84 = vector.broadcast %cst_34 : f32 to vector<16x128xf32>
    %85 = arith.maximumf %83, %84 : vector<16x128xf32>
    %c2_i32_35 = arith.constant 2 : i32
    %86 = tpu.dynamic_rotate %85 by %c2_i32_35 dim 0 : vector<16x128xf32>, i32 -> vector<16x128xf32>
    %cst_36 = arith.constant 0.000000e+00 : f32
    %87 = vector.shape_cast %21 : vector<16x1xi1> to vector<16x1xi1>
    %88 = vector.broadcast %87 : vector<16x1xi1> to vector<16x128xi1>
    %89 = vector.broadcast %cst_36 : f32 to vector<16x128xf32>
    %90 = arith.select %88, %86, %89 : vector<16x128xi1>, vector<16x128xf32>
    %c4_i32_37 = arith.constant 4 : i32
    %91 = tpu.dynamic_rotate %85 by %c4_i32_37 dim 0 : vector<16x128xf32>, i32 -> vector<16x128xf32>
    %cst_38 = arith.constant 0.000000e+00 : f32
    %92 = vector.shape_cast %23 : vector<16x1xi1> to vector<16x1xi1>
    %93 = vector.broadcast %92 : vector<16x1xi1> to vector<16x128xi1>
    %94 = vector.broadcast %cst_38 : f32 to vector<16x128xf32>
    %95 = arith.select %93, %91, %94 : vector<16x128xi1>, vector<16x128xf32>
    %96 = tpu.concatenate %85, %90, %95 in 1 : vector<16x128xf32>, vector<16x128xf32>, vector<16x128xf32> -> vector<16x384xf32>
    %97 = arith.truncf %96 : vector<16x384xf32> to vector<16x384xbf16>
    %c0_39 = arith.constant 0 : index
    %c0_40 = arith.constant 0 : index
    %98 = vector.load %arg8[%c0_39, %c0_40] : memref<384x128xbf16, #tpu.memory_space<vmem>>, vector<384x128xbf16>
    %cst_41 = arith.constant dense<0.000000e+00> : vector<16x128xf32>
    %99 = tpu.matmul %97, %98, %cst_41 {dimension_numbers = #tpu.dot_dimension_numbers<[1], [0], [0], [1], [0, 0, 1, 1], [], []>} : vector<16x384xbf16>, vector<384x128xbf16>, vector<16x128xf32> -> vector<16x128xf32>
    %c0_42 = arith.constant 0 : index
    %c0_43 = arith.constant 0 : index
    %100 = vector.load %arg9[%c0_42, %c0_43] : memref<1x128xf32, #tpu.memory_space<vmem>>, vector<1x128xf32>
    %101 = vector.broadcast %100 : vector<1x128xf32> to vector<16x128xf32>
    %102 = arith.addf %99, %101 : vector<16x128xf32>
    %cst_44 = arith.constant 0.000000e+00 : f32
    %103 = vector.broadcast %cst_44 : f32 to vector<16x128xf32>
    %104 = arith.maximumf %102, %103 : vector<16x128xf32>
    %105 = arith.addf %104, %66 : vector<16x128xf32>
    %cst_45 = arith.constant 0.000000e+00 : f32
    %106 = vector.broadcast %cst_45 : f32 to vector<16x128xf32>
    %107 = arith.maximumf %105, %106 : vector<16x128xf32>
    %c0_46 = arith.constant 0 : index
    %c0_47 = arith.constant 0 : index
    %108 = vector.load %arg13[%c0_46, %c0_47] : memref<16x128xf32, #tpu.memory_space<vmem>>, vector<16x128xf32>
    tpu.vector_store %arg13[%c0_46, %c0_47], %107 {strides = array<i32>} : memref<16x128xf32, #tpu.memory_space<vmem>>, vector<16x128xf32>,
    %c7 = arith.constant 7 : index
    %c0_48 = arith.constant 0 : index
    %109 = tpu.strided_load %arg13[%c7, %c0_48] {strides = array<i32: 8, 1>} : memref<16x128xf32, #tpu.memory_space<vmem>>, vector<2x128xf32>
    %110 = arith.truncf %109 : vector<2x128xf32> to vector<2x128xbf16>
    %c0_49 = arith.constant 0 : index
    %c0_50 = arith.constant 0 : index
    %111 = vector.load %arg10[%c0_49, %c0_50] : memref<128x128xbf16, #tpu.memory_space<vmem>>, vector<128x128xbf16>
    %cst_51 = arith.constant dense<0.000000e+00> : vector<2x128xf32>
    %112 = tpu.matmul %110, %111, %cst_51 {dimension_numbers = #tpu.dot_dimension_numbers<[1], [0], [0], [1], [0, 0, 1, 1], [], []>} : vector<2x128xbf16>, vector<128x128xbf16>, vector<2x128xf32> -> vector<2x128xf32>
    %c0_52 = arith.constant 0 : index
    %c0_53 = arith.constant 0 : index
    %113 = vector.load %arg11[%c0_52, %c0_53] : memref<1x128xf32, #tpu.memory_space<vmem>>, vector<1x128xf32>
    %114 = vector.broadcast %113 : vector<1x128xf32> to vector<2x128xf32>
    %115 = arith.addf %112, %114 : vector<2x128xf32>
    %c0_54 = arith.constant 0 : index
    %c0_55 = arith.constant 0 : index
    %116 = vector.load %arg12[%c0_54, %c0_55] : memref<2x128xf32, #tpu.memory_space<vmem>>, vector<2x128xf32>
    tpu.vector_store %arg12[%c0_54, %c0_55], %115 {strides = array<i32>} : memref<2x128xf32, #tpu.memory_space<vmem>>, vector<2x128xf32>,
    return
  }
  func.func @transform_0(%arg0: i32) -> (i32, i32) {
    %c0_i32 = arith.constant 0 : i32
    %c0_i32_0 = arith.constant 0 : i32
    return %arg0, %c0_i32 : i32, i32
  }
  func.func @transform_1(%arg0: i32) -> (i32, i32) {
    %c0_i32 = arith.constant 0 : i32
    %c0_i32_0 = arith.constant 0 : i32
    %c0_i32_1 = arith.constant 0 : i32
    return %c0_i32, %c0_i32_0 : i32, i32
  }
  func.func @transform_2(%arg0: i32) -> (i32, i32) {
    %c0_i32 = arith.constant 0 : i32
    %c0_i32_0 = arith.constant 0 : i32
    %c0_i32_1 = arith.constant 0 : i32
    return %c0_i32, %c0_i32_0 : i32, i32
  }
  func.func @transform_3(%arg0: i32) -> (i32, i32) {
    %c0_i32 = arith.constant 0 : i32
    %c0_i32_0 = arith.constant 0 : i32
    %c0_i32_1 = arith.constant 0 : i32
    return %c0_i32, %c0_i32_0 : i32, i32
  }
  func.func @transform_4(%arg0: i32) -> (i32, i32) {
    %c0_i32 = arith.constant 0 : i32
    %c0_i32_0 = arith.constant 0 : i32
    %c0_i32_1 = arith.constant 0 : i32
    return %c0_i32, %c0_i32_0 : i32, i32
  }
  func.func @transform_5(%arg0: i32) -> (i32, i32) {
    %c0_i32 = arith.constant 0 : i32
    %c0_i32_0 = arith.constant 0 : i32
    %c0_i32_1 = arith.constant 0 : i32
    return %c0_i32, %c0_i32_0 : i32, i32
  }
  func.func @transform_6(%arg0: i32) -> (i32, i32) {
    %c0_i32 = arith.constant 0 : i32
    %c0_i32_0 = arith.constant 0 : i32
    %c0_i32_1 = arith.constant 0 : i32
    return %c0_i32, %c0_i32_0 : i32, i32
  }
  func.func @transform_7(%arg0: i32) -> (i32, i32) {
    %c0_i32 = arith.constant 0 : i32
    %c0_i32_0 = arith.constant 0 : i32
    %c0_i32_1 = arith.constant 0 : i32
    return %c0_i32, %c0_i32_0 : i32, i32
  }
  func.func @transform_8(%arg0: i32) -> (i32, i32) {
    %c0_i32 = arith.constant 0 : i32
    %c0_i32_0 = arith.constant 0 : i32
    %c0_i32_1 = arith.constant 0 : i32
    return %c0_i32, %c0_i32_0 : i32, i32
  }
  func.func @transform_9(%arg0: i32) -> (i32, i32) {
    %c0_i32 = arith.constant 0 : i32
    %c0_i32_0 = arith.constant 0 : i32
    %c0_i32_1 = arith.constant 0 : i32
    return %c0_i32, %c0_i32_0 : i32, i32
  }
  func.func @transform_10(%arg0: i32) -> (i32, i32) {
    %c0_i32 = arith.constant 0 : i32
    %c0_i32_0 = arith.constant 0 : i32
    %c0_i32_1 = arith.constant 0 : i32
    return %c0_i32, %c0_i32_0 : i32, i32
  }
  func.func @transform_11(%arg0: i32) -> (i32, i32) {
    %c0_i32 = arith.constant 0 : i32
    %c0_i32_0 = arith.constant 0 : i32
    return %arg0, %c0_i32 : i32, i32
  }
}

</mosaic_0001>

<bundles_post_ra>
// kernel: tpu_custom_call.1
= control target key start
LH: loop header
LB: loop body
LE: loop exit
PB: predicated region body
PF: predicated region fallthrough
CT: control target
= control target key end

     0   :  { %16 = vsyncpa [#allocation4], 0  ;;  %s2261_s0 = inlined_call_operand.hbm [shape: f32[16,16], index: 0, kind: input, shape index: {}]   ;;  %s2262_s1 = inlined_call_operand.hbm [shape: bf16[48,256], index: 1, kind: input, shape index: {}]   ;;  %s2263_s2 = inlined_call_operand.vmem [shape: f32[1,256], index: 2, kind: input, shape index: {}]   ;;  %s2264_s3 = inlined_call_operand.hbm [shape: bf16[384,128], index: 3, kind: input, shape index: {}]   ;;  %s2265_s4 = inlined_call_operand.vmem [shape: f32[1,128], index: 4, kind: input, shape index: {}]   ;;  %s2266_s5 = inlined_call_operand.hbm [shape: bf16[384,128], index: 5, kind: input, shape index: {}]   ;;  %s2267_s6 = inlined_call_operand.vmem [shape: f32[1,128], index: 6, kind: input, shape index: {}]   ;;  %s2268_s7 = inlined_call_operand.hbm [shape: bf16[384,128], index: 7, kind: input, shape index: {}]   ;;  %s2269_s8 = inlined_call_operand.vmem [shape: f32[1,128], index: 8, kind: input, shape index: {}]   ;;  %s2270_s9 = inlined_call_operand.hbm [shape: bf16[128,128], index: 9, kind: input, shape index: {}]   ;;  %s2271_s10 = inlined_call_operand.vmem [shape: f32[1,128], index: 10, kind: input, shape index: {}]   ;;  %s2272_s11 = inlined_call_operand.hbm [shape: f32[2,128], index: 11, kind: output, shape index: {}]  }
   0x1   :  { %17 = vsyncpa [#allocation7], 0 }
   0x2   :  { %18 = vsyncpa [#allocation10], 0 }
   0x3   :  { %19 = vsyncpa [#allocation13], 0 }
   0x4   :  { %20 = vsyncpa [#allocation5], 0  ;;  %s1911_s17 = smov [#allocation6]   ;;  %s1747_s21 = scalar_lea.hbm %s2262_s1, 768 }
   0x5   :  { %s38_s18 = sshll.u32 %s1911_s17, 4  ;;  %p1748_p0 = scmp.ne.s32.totalorder %s2262_s1, %s1747_s21  ;;  %s39_s18 = int_to_ptr.vmem [resolvable:$true] %s38_s18 }
   0x6   :  { %p1751_p1 = scmp.lt.u32.totalorder %s1747_s21, %s2262_s1 }
   0x8   :  { %p1753_p2 = pnand %p1751_p1, %p1748_p0 }
   0xa   :  { %1756 = shalt.err (!%p1753_p2)
}
   0xb   :  { %s1757_s26 = scalar_lea.vmem %s39_s18, 768  ;;  %p1762_p4 = scmp.lt.s32.totalorder %s39_s18, %s39_s18 }
   0xc   :  { %p1758_p3 = scmp.ne.s32.totalorder %s39_s18, %s1757_s26  ;;  %p1763_p5 = scmp.lt.s32.totalorder %s1757_s26, %s1757_s26 }
   0xe   :  { %p1764_p6 = por %p1763_p5, %p1762_p4 }
  0x10   :  { %p1765_p7 = pnand %p1764_p6, %p1758_p3 }
  0x12   :  { %1768 = shalt.err (!%p1765_p7)
}
  0x13   :  { %s1912_s27 = smov 128   ;;  %s1913_s28 = smov 8  }
  0x14   :  { %44 = dma.hbm_to_vmem [thread:$0]  %s2262_s1, 768, %s39_s18, [#allocation7], %s1912_s27, %s1912_s27, %s1913_s28  }
  0x15   :  { %s1914_s12 = smov [#allocation9]   ;;  %s1915_s14 = smov [#allocation3]  }
  0x16   :  { %s66_s13 = sshll.u32 %s1914_s12, 4  ;;  %s26_s15 = sshll.u32 %s1915_s14, 4  ;;  %s67_s13 = int_to_ptr.vmem [resolvable:$true] %s66_s13  ;;  %s27_s15 = int_to_ptr.vmem [resolvable:$true] %s26_s15 }
  0x17   :  { %s1769_s19 = scalar_lea.hbm %s2266_s5, 3072 }
  0x18   :  { %p1770_p8 = scmp.ne.s32.totalorder %s2266_s5, %s1769_s19  ;;  %p1773_p9 = scmp.lt.u32.totalorder %s1769_s19, %s2266_s5 }
  0x1a   :  { %p1775_p10 = pnand %p1773_p9, %p1770_p8 }
  0x1c   :  { %1778 = shalt.err (!%p1775_p10)
}
  0x1d   :  { %s1779_s1 = scalar_lea.vmem %s67_s13, 3072  ;;  %p1784_p12 = scmp.lt.s32.totalorder %s67_s13, %s67_s13 }
  0x1e   :  { %p1780_p11 = scmp.ne.s32.totalorder %s67_s13, %s1779_s1  ;;  %p1785_p13 = scmp.lt.s32.totalorder %s1779_s1, %s1779_s1 }
  0x20   :  { %p1786_p0 = por %p1785_p13, %p1784_p12 }
  0x22   :  { %p1787_p1 = pnand %p1786_p0, %p1780_p11 }
  0x24   :  { %1790 = shalt.err (!%p1787_p1)
}
  0x25   :  { %s1916_s18 = smov 64   ;;  %s1917_s24 = smov 4  }
  0x26   :  { %72 = dma.hbm_to_vmem [thread:$0]  %s2266_s5, 3072, %s67_s13, [#allocation10], %s1916_s18, %s1916_s18, %s1917_s24  }
  0x27   :  { %s1791_s12 = scalar_lea.hbm %s2261_s0, 256 }
  0x28   :  { %p1792_p2 = scmp.ne.s32.totalorder %s2261_s0, %s1791_s12  ;;  %p1795_p3 = scmp.lt.u32.totalorder %s1791_s12, %s2261_s0 }
  0x2a   :  { %p1797_p4 = pnand %p1795_p3, %p1792_p2 }
  0x2c   :  { %1800 = shalt.err (!%p1797_p4)
}
  0x2d   :  { %s1801_s20 = scalar_lea.vmem %s27_s15, 256  ;;  %p1806_p6 = scmp.lt.s32.totalorder %s27_s15, %s27_s15 }
  0x2e   :  { %p1802_p5 = scmp.ne.s32.totalorder %s27_s15, %s1801_s20  ;;  %p1807_p7 = scmp.lt.s32.totalorder %s1801_s20, %s1801_s20 }
  0x30   :  { %p1808_p8 = por %p1807_p7, %p1806_p6 }
  0x32   :  { %p1809_p9 = pnand %p1808_p8, %p1802_p5 }
  0x34   :  { %1812 = shalt.err (!%p1809_p9)
}
  0x35   :  { %32 = dma.hbm_to_vmem [thread:$0]  %s2261_s0, 256, %s27_s15, [#allocation4], %s1912_s27, %s1912_s27, %s1913_s28  }
  0x36   :  { %s1918_s21 = smov [#allocation8]   ;;  %s1919_s23 = smov [#allocation11]  }
  0x37   :  { %s52_s22 = sshll.u32 %s1918_s21, 4  ;;  %s80_s1 = sshll.u32 %s1919_s23, 4  ;;  %s53_s22 = int_to_ptr.vmem [resolvable:$true] %s52_s22  ;;  %s81_s1 = int_to_ptr.vmem [resolvable:$true] %s80_s1 }
  0x38   :  { %s1813_s29 = scalar_lea.hbm %s2264_s3, 3072 }
  0x39   :  { %p1814_p10 = scmp.ne.s32.totalorder %s2264_s3, %s1813_s29  ;;  %p1817_p11 = scmp.lt.u32.totalorder %s1813_s29, %s2264_s3 }
  0x3b   :  { %p1819_p12 = pnand %p1817_p11, %p1814_p10 }
  0x3d   :  { %1822 = shalt.err (!%p1819_p12)
}
  0x3e   :  { %s1823_s0 = scalar_lea.vmem %s53_s22, 3072  ;;  %p1828_p0 = scmp.lt.s32.totalorder %s53_s22, %s53_s22 }
  0x3f   :  { %p1824_p13 = scmp.ne.s32.totalorder %s53_s22, %s1823_s0  ;;  %p1829_p1 = scmp.lt.s32.totalorder %s1823_s0, %s1823_s0 }
  0x41   :  { %p1830_p2 = por %p1829_p1, %p1828_p0 }
  0x43   :  { %p1831_p3 = pnand %p1830_p2, %p1824_p13 }
  0x45   :  { %1834 = shalt.err (!%p1831_p3)
}
  0x46   :  { %58 = dma.hbm_to_vmem [thread:$0]  %s2264_s3, 3072, %s53_s22, [#allocation7], %s1916_s18, %s1916_s18, %s1917_s24  }
  0x47   :  { %s1835_s19 = scalar_lea.hbm %s2268_s7, 3072 }
  0x48   :  { %p1836_p4 = scmp.ne.s32.totalorder %s2268_s7, %s1835_s19  ;;  %p1839_p5 = scmp.lt.u32.totalorder %s1835_s19, %s2268_s7 }
  0x4a   :  { %p1841_p6 = pnand %p1839_p5, %p1836_p4 }
  0x4c   :  { %1844 = shalt.err (!%p1841_p6)
}
  0x4d   :  { %s1845_s23 = scalar_lea.vmem %s81_s1, 3072  ;;  %p1850_p8 = scmp.lt.s32.totalorder %s81_s1, %s81_s1 }
  0x4e   :  { %p1846_p7 = scmp.ne.s32.totalorder %s81_s1, %s1845_s23  ;;  %p1851_p9 = scmp.lt.s32.totalorder %s1845_s23, %s1845_s23 }
  0x50   :  { %p1852_p10 = por %p1851_p9, %p1850_p8 }
  0x52   :  { %p1853_p11 = pnand %p1852_p10, %p1846_p7 }
  0x54   :  { %1856 = shalt.err (!%p1853_p11)
}
  0x55   :  { %86 = dma.hbm_to_vmem [thread:$0]  %s2268_s7, 3072, %s81_s1, [#allocation10], %s1916_s18, %s1916_s18, %s1917_s24  }
  0x56   :  { %s1920_s25 = smov [#allocation12]   ;;  %s1857_s12 = scalar_lea.hbm %s2270_s9, 1024 }
  0x57   :  { %s94_s26 = sshll.u32 %s1920_s25, 4  ;;  %p1858_p12 = scmp.ne.s32.totalorder %s2270_s9, %s1857_s12  ;;  %s95_s26 = int_to_ptr.vmem [resolvable:$true] %s94_s26 }
  0x58   :  { %p1861_p13 = scmp.lt.u32.totalorder %s1857_s12, %s2270_s9 }
  0x5a   :  { %p1863_p0 = pnand %p1861_p13, %p1858_p12 }
  0x5c   :  { %1866 = shalt.err (!%p1863_p0)
}
  0x5d   :  { %s1867_s28 = scalar_lea.vmem %s95_s26, 1024  ;;  %p1872_p2 = scmp.lt.s32.totalorder %s95_s26, %s95_s26 }
  0x5e   :  { %p1868_p1 = scmp.ne.s32.totalorder %s95_s26, %s1867_s28  ;;  %p1873_p3 = scmp.lt.s32.totalorder %s1867_s28, %s1867_s28 }
  0x60   :  { %p1874_p4 = por %p1873_p3, %p1872_p2 }
  0x62   :  { %p1875_p5 = pnand %p1874_p4, %p1868_p1 }
  0x64   :  { %1878 = shalt.err (!%p1875_p5)
}
  0x65   :  { %100 = dma.hbm_to_vmem [thread:$0]  %s2270_s9, 1024, %s95_s26, [#allocation13], %s1916_s18, %s1916_s18, %s1917_s24  }
  0x66   :  { %1901 = dma.done.wait [#allocation4], 256  }
  0x67   :  { %1902 = vsyncadd [#allocation4], 4294967040 }
  0x68   :  { %1903 = dma.done.wait [#allocation7], 3840  }
  0x69   :  { %1904 = vsyncadd [#allocation7], 4294963456 }
  0x6a   :  { %1905 = dma.done.wait [#allocation10], 6144  }
  0x6b   :  { %1906 = vsyncadd [#allocation10], 4294961152 }
  0x6c   :  { %1907 = dma.done.wait [#allocation13], 1024  }
  0x6d   :  { %1908 = vsyncadd [#allocation13], 4294966272  ;;  %v124_v0 = vlaneseq  ;;  %v2086_v5 = vld [vmem:[#allocation3] sm:$0xff]  ;;  %v2088_v6 = vld [vmem:[#allocation3 + $0x8] sm:$0xff]  ;;  %v1921_v20 = vmov 0   ;;  %s1922_s9 = smov 16  }
  0x6e   :  { %v157_v7 = vrot.slane %v2086_v5, 7  ;;  %v158_v8 = vrot.slane %v2088_v6, 7  ;;  %v168_v9 = vrot.slane %v2086_v5, 6  ;;  %v169_v10 = vrot.slane %v2088_v6, 6  ;;  %v1658_v11 = vld [vmem:[#allocation6 + $0x4] ss:$8 sps:$4 sm:$0xff]   ;;  %286 = vmatprep.mubr.bf16.mxu0 %v1921_v20 }
  0x6f   :  { %v2077_v1 = vshrl.u32 %v124_v0, 7  ;;  %v1660_v12 = vld [vmem:[#allocation6] ss:$8 sps:$4 sm:$0xff]   ;;  %v1661_v15 = vld [vmem:[#allocation6 + $0x14] ss:$8 sps:$4 sm:$0xff]   ;;  %254 = vmatprep.subr.bf16.mxu0 %v1658_v11  ;;  %s1923_s18 = smov 32  }
  0x70   :  { %255 = vmatpush1.bf16.msra.mxu0 %v1660_v12  ;;  %v1663_v24 = vld [vmem:[#allocation6 + $0x10] ss:$8 sps:$4 sm:$0xff]   ;;  %v1664_v26 = vld [vmem:[#allocation6 + $0x24] ss:$8 sps:$4 sm:$0xff]   ;;  %v1666_v28 = vld [vmem:[#allocation6 + $0x20] ss:$8 sps:$4 sm:$0xff]  }
  0x71   :  { %v126_v2 = vadd.s32 8, %v2077_v1  ;;  %v2081_v3 = vand.u32 7, %v2077_v1  ;;  %vm159_vm0 = vcmp.lt.s32.totalorder %v2077_v1, 1  ;;  %vm170_vm3 = vcmp.lt.s32.totalorder %v2077_v1, 2  ;;  %v1667_v25 = vld [vmem:[#allocation8 + $0x40] sm:$0xff]   ;;  %256 = vmatprep.subr.bf16.mxu0 %v1661_v15  ;;  %v1670_v30 = vld [vmem:[#allocation8 + $0x48] sm:$0xff]  }
  0x72   :  { %v160_v13 = vsel %vm159_vm0, %v157_v7, %v158_v8  ;;  %v161_v14 = vsel %vm159_vm0, %v158_v8, %v157_v7  ;;  %v171_v18 = vsel %vm170_vm3, %v168_v9, %v169_v10  ;;  %v172_v19 = vsel %vm170_vm3, %v169_v10, %v168_v9  ;;  %1450 = vmatprep.subr.bf16.mxu1 %v1667_v25  ;;  %v1669_v29 = vld [vmem:[#allocation8] sm:$0xff]   ;;  %v1672_v31 = vld [vmem:[#allocation8 + $0x8] sm:$0xff]   ;;  %v1673_v32 = vld [vmem:[#allocation8 + $0x50] sm:$0xff]   ;;  %s1926_s13 = smov [#allocation14]  }
  0x73   :  { %v2083_v4 = vand.u32 7, %v126_v2  ;;  %vm151_vm1 = vcmp.ge.s32.totalorder %v2081_v3, 1  ;;  %vm153_vm2 = vcmp.ge.s32.totalorder %v2081_v3, 2  ;;  %1451 = vmatpush3.bf16.msra.mxu1 %v1669_v29  ;;  %v1924_v33 = vmov 0.0   ;;  %v1675_v34 = vld [vmem:[#allocation8 + $0x10] sm:$0xff]   ;;  %v1676_v35 = vld [vmem:[#allocation8 + $0x58] sm:$0xff]  }
  0x74   :  { %v166_v16 = vsel %vm151_vm1, %v161_v14, 0.0  ;;  %v177_v22 = vsel %vm153_vm2, %v172_v19, 0.0  ;;  %257 = vmatpush1.bf16.msra.mxu0 %v1663_v24  ;;  %1452 = vmatprep.subr.bf16.mxu1 %v1670_v30  ;;  %v1678_v36 = vld [vmem:[#allocation8 + $0x18] sm:$0xff]   ;;  %v1679_v37 = vld [vmem:[#allocation8 + $0x60] sm:$0xff]   ;;  %vm195_vm6 = vcmask 130048   ;;  %vm198_vm7 = vcmask 261120  }
  0x75   :  { %vm152_vm4 = vcmp.ge.s32.totalorder %v2083_v4, 1  ;;  %vm154_vm5 = vcmp.ge.s32.totalorder %v2083_v4, 2  ;;  %258 = vmatprep.subr.bf16.mxu0 %v1664_v26  ;;  %v1681_v38 = vld [vmem:[#allocation8 + $0x20] sm:$0xff]   ;;  %vm250_vm8 = vcmask 392192   ;;  %v1671_v51 = vld [vmem:[#allocation8 + $0x88] sm:$0xff]   ;;  %v1674_v52 = vld [vmem:[#allocation8 + $0x90] sm:$0xff]  }
  0x76   :  { %v167_v17 = vsel %vm152_vm4, %v160_v13, 0.0  ;;  %v178_v23 = vsel %vm154_vm5, %v171_v18, 0.0  ;;  %v1668_v49 = vld [vmem:[#allocation8 + $0x80] sm:$0xff]   ;;  %v1677_v53 = vld [vmem:[#allocation8 + $0x98] sm:$0xff]   ;;  %v1682_v55 = vld [vmem:[#allocation8 + $0x68] sm:$0xff]   ;;  %vm1925_vm9 = vmmov 0  }
  0x77   :  { %v1648_v21 = vpack.i.bf16 %v167_v17, %v166_v16  ;;  %v1653_v27 = vpack.i.bf16 %v178_v23, %v177_v22  ;;  %1453 = vmatpush3.bf16.msra.mxu1 %v1672_v31  ;;  %v1680_v54 = vld [vmem:[#allocation8 + $0xa0] sm:$0xff]   ;;  %v1683_v56 = vld [vmem:[#allocation8 + $0xa8] sm:$0xff]   ;;  %v1685_v58 = vld [vmem:[#allocation8 + $0x70] sm:$0xff]   ;;  %v212_v2 = vsub.s32 0, %v2077_v1  ;;  %vm155_vm12 = vcmp.ge.s32.totalorder %v2081_v3, 4  ;;  %s1329_s21 = sshll.u32 %s1926_s13, 4  ;;  %s1330_s21 = int_to_ptr.vmem [resolvable:$true] %s1329_s21 }
  0x78   :  { %259 = vmatpush1.bf16.msra.mxu0 %v1666_v28  ;;  %1454 = vmatprep.subr.bf16.mxu1 %v1673_v32  ;;  %v1684_v57 = vld [vmem:[#allocation8 + $0x28] sm:$0xff]   ;;  %v1686_v59 = vld [vmem:[#allocation8 + $0xb0] sm:$0xff]   ;;  %v1688_v61 = vld [vmem:[#allocation8 + $0x78] sm:$0xff]   ;;  %vm156_vm13 = vcmp.ge.s32.totalorder %v2083_v4, 4  ;;  %vm609_vm14 = vcmp.lt.s32.totalorder %v2077_v1, 4  ;;  %s1879_s23 = scalar_lea.vmem %s1330_s21, 32  ;;  %p1884_p7 = scmp.lt.s32.totalorder %s1330_s21, %s1330_s21 }
  0x79   :  { %1649 = vrot.lane.b32.xlu0 %v1648_v21, %s1922_s9  ;;  %1552 = vmatprep.subr.bf16.mxu0 %v1924_v33  ;;  %v1687_v60 = vld [vmem:[#allocation8 + $0x30] sm:$0xff]   ;;  %v1689_v62 = vld [vmem:[#allocation8 + $0xb8] sm:$0xff]   ;;  %v1691_v0 = vld [vmem:[#allocation9 + $0x40] sm:$0xff]   ;;  %p1880_p6 = scmp.ne.s32.totalorder %s1330_s21, %s1879_s23  ;;  %p1885_p8 = scmp.lt.s32.totalorder %s1879_s23, %s1879_s23 }
  0x7a   :  { %v1690_v63 = vld [vmem:[#allocation8 + $0x38] sm:$0xff]   ;;  %vm1373_vm10 = vmpackc.low %vm152_vm4, %vm151_vm1  ;;  %v1692_v25 = vld [vmem:[#allocation9 + $0x80] sm:$0xff]  }
  0x7b   :  { %1455 = vmatpush3.bf16.msra.mxu1 %v1675_v34  ;;  %vm2155_vm11 = vmpackc.low %vm154_vm5, %vm153_vm2  ;;  %v1693_v28 = vld [vmem:[#allocation9] sm:$0xff]   ;;  %v1694_v29 = vld [vmem:[#allocation9 + $0x48] sm:$0xff]   ;;  %p1886_p9 = por %p1885_p8, %p1884_p7 }
  0x7c   :  { %1456 = vmatprep.subr.bf16.mxu1 %v1676_v35  ;;  %v1695_v30 = vld [vmem:[#allocation9 + $0x88] sm:$0xff]   ;;  %v1697_v32 = vld [vmem:[#allocation9 + $0x50] sm:$0xff]   ;;  %vm2197_vm15 = vmpackc.low %vm156_vm13, %vm155_vm12 }
  0x7d   :  { %1654 = vrot.lane.b32.xlu0 %v1653_v27, %s1923_s18  ;;  %v1696_v31 = vld [vmem:[#allocation9 + $0x8] sm:$0xff]   ;;  %v1698_v34 = vld [vmem:[#allocation9 + $0x90] sm:$0xff]   ;;  %v1742_v24 = vld [vmem:[#allocation12 + $0x18] sm:$0xff]   ;;  %p1887_p10 = pnand %p1886_p9, %p1880_p6 }
  0x7e   :  { %v1699_v35 = vld [vmem:[#allocation9 + $0x10] sm:$0xff]  }
  0x7f   :  { %1457 = vmatpush3.bf16.msra.mxu1 %v1678_v36  ;;  %v1700_v36 = vld [vmem:[#allocation9 + $0x58] sm:$0xff]  }
  0x80   :  { %1458 = vmatprep.subr.bf16.mxu1 %v1679_v37  ;;  %v1701_v37 = vld [vmem:[#allocation9 + $0x98] sm:$0xff]  }
  0x83   :  { %1459 = vmatpush3.bf16.msra.mxu1 %v1681_v38  ;;  %v1702_v38 = vld [vmem:[#allocation9 + $0x18] sm:$0xff]  }
  0x84   :  { %1460 = vmatprep.subr.bf16.mxu1 %v1682_v55 }
  0x87   :  { %1461 = vmatpush3.bf16.msra.mxu1 %v1684_v57 }
  0x88   :  { %1462 = vmatprep.subr.bf16.mxu1 %v1685_v58 }
  0x8b   :  { %1463 = vmatpush3.bf16.msra.mxu1 %v1687_v60 }
  0x8c   :  { %1464 = vmatprep.subr.bf16.mxu1 %v1688_v61 }
  0x8f   :  { %1465 = vmatpush3.bf16.msra.mxu1 %v1690_v63 }
  0x90   :  { %1481 = vmatprep.subr.bf16.mxu1 %v1691_v0 }
  0xeb   :  { %v1650_v39 = vpop.permute.xlu0 %1649 }
  0xec   :  { %v1652_v40 = vunpack.i.h.bf16 %v1650_v39  ;;  %v1651_v41 = vunpack.i.l.bf16 %v1650_v39  ;;  %v1703_v39 = vld [vmem:[#allocation9 + $0x60] sm:$0xff]  }
  0xee   :  { %v197_v45 = vsel %vm195_vm6, %v2088_v6, %v1652_v40  ;;  %v196_v46 = vsel %vm195_vm6, %v2086_v5, %v1651_v41  ;;  %v2132_v5 = vld [vmem:[%s2263_s2] sm:$0x3]  ;;  %v1704_v40 = vld [vmem:[#allocation9 + $0xa0] sm:$0xff]  }
  0xef   :  { %v1655_v42 = vpop.permute.xlu0 %1654  ;;  %v213_v6 = vrot.slane %v2132_v5, %v212_v2  ;;  %v1705_v41 = vld [vmem:[#allocation9 + $0x20] sm:$0xff]  }
  0xf0   :  { %v1657_v43 = vunpack.i.h.bf16 %v1655_v42  ;;  %v1656_v44 = vunpack.i.l.bf16 %v1655_v42  ;;  %v1706_v42 = vld [vmem:[#allocation9 + $0x68] sm:$0xff]  }
  0xf2   :  { %v199_v47 = vsel %vm198_vm7, %v196_v46, %v1656_v44  ;;  %v200_v48 = vsel %vm198_vm7, %v197_v45, %v1657_v43  ;;  %v1707_v43 = vld [vmem:[#allocation9 + $0xa8] sm:$0xff]   ;;  %v1709_v45 = vld [vmem:[#allocation9 + $0x70] sm:$0xff]  }
  0xf3   :  { %v201_v50 = vpack.c.bf16 %v200_v48, %v199_v47  ;;  %v1708_v44 = vld [vmem:[#allocation9 + $0x28] sm:$0xff]   ;;  %v1710_v46 = vld [vmem:[#allocation9 + $0xb0] sm:$0xff]   ;;  %v1712_v48 = vld [vmem:[#allocation9 + $0x78] sm:$0xff]  }
  0xf4   :  { %v1711_v47 = vld [vmem:[#allocation9 + $0x30] sm:$0xff]  }
  0xf5   :  { %1347 = vmatmul.mubr.msk.bf16.vlgmr.msra.gmra.mrb[0].mxu0 %vm250_vm8, %v201_v50  ;;  %v1714_v50 = vld [vmem:[#allocation9 + $0x38] sm:$0xff]  }
  0xf6   :  { %1553 = vmatpush3.bf16.msra.mxu0 %v1668_v49  ;;  %1568 = vmatprep.mubr.msk.bf16.mxu0 %vm1925_vm9, %v1924_v33  ;;  %v1713_v49 = vld [vmem:[#allocation9 + $0xb8] sm:$0xff]  }
  0xf7   :  { %1554 = vmatprep.subr.bf16.mxu0 %v1924_v33 }
  0xfa   :  { %1555 = vmatpush3.bf16.msra.mxu0 %v1671_v51  ;;  %v1715_v51 = vld [vmem:[#allocation11 + $0x40] sm:$0xff]  }
  0xfb   :  { %1556 = vmatprep.subr.bf16.mxu0 %v1924_v33 }
  0xfe   :  { %1557 = vmatpush3.bf16.msra.mxu0 %v1674_v52 }
  0xff   :  { %1558 = vmatprep.subr.bf16.mxu0 %v1924_v33 }
 0x102   :  { %1559 = vmatpush3.bf16.msra.mxu0 %v1677_v53  ;;  %v216_v53 = vsub.s32 1, %v2077_v1  ;;  %v1741_v1 = vld [vmem:[#allocation12 + $0x10] sm:$0xff]  }
 0x103   :  { %1560 = vmatprep.subr.bf16.mxu0 %v1924_v33 }
 0x104   :  { %v217_v63 = vrot.slane %v2132_v5, %v216_v53 }
 0x106   :  { %1561 = vmatpush3.bf16.msra.mxu0 %v1680_v54 }
 0x107   :  { %1562 = vmatprep.subr.bf16.mxu0 %v1924_v33 }
 0x10a   :  { %1563 = vmatpush3.bf16.msra.mxu0 %v1683_v56  ;;  %v1348_v56 = vld [vmem:[%s2265_s4] ss:$0 sm:$0xff] }
 0x10b   :  { %1564 = vmatprep.subr.bf16.mxu0 %v1924_v33 }
 0x10e   :  { %1565 = vmatpush3.bf16.msra.mxu0 %v1686_v59 }
 0x10f   :  { %1566 = vmatprep.subr.bf16.mxu0 %v1924_v33 }
 0x112   :  { %1567 = vmatpush3.bf16.msra.mxu0 %v1689_v62 }
 0x113   :  { %1572 = vmatprep.subr.bf16.mxu0 %v1924_v33 }
 0x1c8   :  { %v288_v7 = vpop.f32.mrb[0].mxu0 }
 0x1c9   :  { %v289_v8 = vadd.f32 %v288_v7, %v213_v6  ;;  %v2135_v9 = vpop.f32.mrb[1].mxu0 }
 0x1ca   :  { %v292_v10 = vpop.f32.mrb[2].mxu0 }
 0x1cb   :  { %v297_v11 = vmax.f32 %v289_v8, 0.0  ;;  %v293_v12 = vadd.f32 %v292_v10, %v213_v6  ;;  %v2137_v13 = vpop.f32.mrb[3].mxu0  ;;  %v291_v8 = vadd.f32 %v2135_v9, %v217_v63 }
 0x1cd   :  { %v298_v14 = vmax.f32 %v293_v12, 0.0  ;;  %v299_v15 = vrot.slane %v297_v11, 7  ;;  %v305_v16 = vrot.slane %v297_v11, 6  ;;  %v295_v12 = vadd.f32 %v2137_v13, %v217_v63 }
 0x1cf   :  { %v300_v17 = vrot.slane %v298_v14, 7  ;;  %v306_v18 = vrot.slane %v298_v14, 6  ;;  %v311_v19 = vpack.c.bf16 %v298_v14, %v297_v11 }
 0x1d1   :  { %v307_v20 = vsel %vm170_vm3, %v305_v16, %v306_v18  ;;  %v308_v21 = vsel %vm170_vm3, %v306_v18, %v305_v16  ;;  %v301_v22 = vsel %vm159_vm0, %v299_v15, %v300_v17  ;;  %v302_v23 = vsel %vm159_vm0, %v300_v17, %v299_v15 }
 0x1d2   :  { %v1377_v26 = vpack.c.bf16 %v307_v20, %v308_v21  ;;  %v1374_v27 = vpack.c.bf16 %v301_v22, %v302_v23  ;;  %v1716_v23 = vld [vmem:[#allocation11 + $0x80] sm:$0xff]   ;;  %v1745_v22 = vld [vmem:[#allocation12 + $0x30] sm:$0xff]  }
 0x1d4   :  { %1375 = vmatprep.mubr.msk.bf16.mxu1 %vm1373_vm10, %v1374_v27  ;;  %1569 = vmatmul.mubr.msk.bf16.vlgmr.msra.gmra.mrb[4].mxu0 %vm2155_vm11, %v1377_v26  ;;  %v1717_v27 = vld [vmem:[#allocation11] sm:$0xff]  }
 0x1d5   :  { %546 = vmatmul.mubr.bf16.vlgmr.msra.gmra.mrb[0].mxu1 %v311_v19  ;;  %1573 = vmatpush3.bf16.msra.mxu0 %v1692_v25 }
 0x1d6   :  { %1482 = vmatpush3.bf16.msra.mxu1 %v1693_v28  ;;  %1574 = vmatprep.subr.bf16.mxu0 %v1924_v33 }
 0x1d7   :  { %1483 = vmatprep.subr.bf16.mxu1 %v1694_v29  ;;  %1588 = vmatprep.mubr.msk.bf16.mxu0 %vm1925_vm9, %v1924_v33  ;;  %v1718_v29 = vld [vmem:[#allocation11 + $0x48] sm:$0xff]  }
 0x1d9   :  { %1575 = vmatpush3.bf16.msra.mxu0 %v1695_v30  ;;  %v1719_v30 = vld [vmem:[#allocation11 + $0x88] sm:$0xff]  }
 0x1da   :  { %1484 = vmatpush3.bf16.msra.mxu1 %v1696_v31  ;;  %1576 = vmatprep.subr.bf16.mxu0 %v1924_v33  ;;  %v1720_v31 = vld [vmem:[#allocation11 + $0x8] sm:$0xff]  }
 0x1db   :  { %1485 = vmatprep.subr.bf16.mxu1 %v1697_v32  ;;  %v1721_v32 = vld [vmem:[#allocation11 + $0x50] sm:$0xff]  }
 0x1dd   :  { %1577 = vmatpush3.bf16.msra.mxu0 %v1698_v34  ;;  %v1722_v34 = vld [vmem:[#allocation11 + $0x90] sm:$0xff]  }
 0x1de   :  { %1578 = vmatprep.subr.bf16.mxu0 %v1924_v33  ;;  %1486 = vmatpush3.bf16.msra.mxu1 %v1699_v35  ;;  %v1723_v35 = vld [vmem:[#allocation11 + $0x10] sm:$0xff]  }
 0x1df   :  { %1487 = vmatprep.subr.bf16.mxu1 %v1700_v36  ;;  %v1724_v36 = vld [vmem:[#allocation11 + $0x58] sm:$0xff]  }
 0x1e1   :  { %1579 = vmatpush3.bf16.msra.mxu0 %v1701_v37  ;;  %v1725_v37 = vld [vmem:[#allocation11 + $0x98] sm:$0xff]  }
 0x1e2   :  { %1488 = vmatpush3.bf16.msra.mxu1 %v1702_v38  ;;  %1580 = vmatprep.subr.bf16.mxu0 %v1924_v33  ;;  %v1726_v38 = vld [vmem:[#allocation11 + $0x18] sm:$0xff]  }
 0x1e3   :  { %1489 = vmatprep.subr.bf16.mxu1 %v1703_v39  ;;  %v1727_v39 = vld [vmem:[#allocation11 + $0x60] sm:$0xff]  }
 0x1e5   :  { %1581 = vmatpush3.bf16.msra.mxu0 %v1704_v40  ;;  %v1728_v40 = vld [vmem:[#allocation11 + $0xa0] sm:$0xff]  }
 0x1e6   :  { %1490 = vmatpush3.bf16.msra.mxu1 %v1705_v41  ;;  %1582 = vmatprep.subr.bf16.mxu0 %v1924_v33  ;;  %v1729_v41 = vld [vmem:[#allocation11 + $0x20] sm:$0xff]  }
 0x1e7   :  { %1491 = vmatprep.subr.bf16.mxu1 %v1706_v42  ;;  %v1730_v42 = vld [vmem:[#allocation11 + $0x68] sm:$0xff]  }
 0x1e9   :  { %1583 = vmatpush3.bf16.msra.mxu0 %v1707_v43  ;;  %v1731_v43 = vld [vmem:[#allocation11 + $0xa8] sm:$0xff]  }
 0x1ea   :  { %1492 = vmatpush3.bf16.msra.mxu1 %v1708_v44  ;;  %1584 = vmatprep.subr.bf16.mxu0 %v1924_v33  ;;  %v1732_v44 = vld [vmem:[#allocation11 + $0x28] sm:$0xff]  }
 0x1eb   :  { %1493 = vmatprep.subr.bf16.mxu1 %v1709_v45  ;;  %v1733_v45 = vld [vmem:[#allocation11 + $0x70] sm:$0xff]  }
 0x1ed   :  { %1585 = vmatpush3.bf16.msra.mxu0 %v1710_v46  ;;  %v1734_v46 = vld [vmem:[#allocation11 + $0xb0] sm:$0xff]  }
 0x1ee   :  { %1494 = vmatpush3.bf16.msra.mxu1 %v1711_v47  ;;  %1586 = vmatprep.subr.bf16.mxu0 %v1924_v33  ;;  %v1735_v47 = vld [vmem:[#allocation11 + $0x30] sm:$0xff]  }
 0x1ef   :  { %1495 = vmatprep.subr.bf16.mxu1 %v1712_v48  ;;  %v1736_v48 = vld [vmem:[#allocation11 + $0x78] sm:$0xff]  }
 0x1f1   :  { %1587 = vmatpush3.bf16.msra.mxu0 %v1713_v49  ;;  %v1737_v49 = vld [vmem:[#allocation11 + $0xb8] sm:$0xff]  }
 0x1f2   :  { %1496 = vmatpush3.bf16.msra.mxu1 %v1714_v50  ;;  %1592 = vmatprep.subr.bf16.mxu0 %v1924_v33  ;;  %v1738_v50 = vld [vmem:[#allocation11 + $0x38] sm:$0xff]  }
 0x1f3   :  { %1512 = vmatprep.subr.bf16.mxu1 %v1715_v51 }
 0x2a7   :  { %v588_v52 = vpop.f32.mrb[4].mxu0 }
 0x2a8   :  { %v1466_v54 = vpop.f32.mrb[0].mxu1  ;;  %v1570_v55 = vpop.f32.mrb[5].mxu0 }
 0x2a9   :  { %v1467_v57 = vpop.f32.mrb[1].mxu1  ;;  %v591_v58 = vpop.f32.mrb[6].mxu0 }
 0x2aa   :  { %v1468_v59 = vadd.f32 %v1467_v57, %v1466_v54  ;;  %v1469_v60 = vpop.f32.mrb[2].mxu1  ;;  %v1571_v61 = vpop.f32.mrb[7].mxu0  ;;  %v1379_v54 = vld [vmem:[%s2267_s6] ss:$0 sm:$0xff] }
 0x2ab   :  { %v1470_v62 = vpop.f32.mrb[3].mxu1 }
 0x2ac   :  { %v548_v0 = vadd.f32 %v1468_v59, %v1348_v56  ;;  %v1471_v2 = vadd.f32 %v1470_v62, %v1469_v60 }
 0x2ae   :  { %v589_v6 = vadd.f32 %v588_v52, %v548_v0  ;;  %v551_v7 = vadd.f32 %v1471_v2, %v1348_v56 }
 0x2b0   :  { %v595_v10 = vmax.f32 %v589_v6, 0.0  ;;  %v592_v11 = vadd.f32 %v591_v58, %v551_v7 }
 0x2b2   :  { %v597_v14 = vadd.f32 %v595_v10, %v291_v8  ;;  %v596_v15 = vmax.f32 %v592_v11, 0.0 }
 0x2b4   :  { %v2178_v16 = vmax.f32 %v597_v14, 0.0  ;;  %v598_v17 = vadd.f32 %v596_v15, %v295_v12 }
 0x2b6   :  { %v2180_v18 = vmax.f32 %v598_v17, 0.0  ;;  %v607_v5 = vrot.slane %v2178_v16, 4  ;;  %v601_v19 = vrot.slane %v2178_v16, 6 }
 0x2b8   :  { %v608_v9 = vrot.slane %v2180_v18, 4  ;;  %v602_v13 = vrot.slane %v2180_v18, 6  ;;  %v618_v28 = vpack.c.bf16 %v2180_v18, %v2178_v16 }
 0x2ba   :  { %v603_v20 = vsel %vm170_vm3, %v601_v19, %v602_v13  ;;  %v604_v21 = vsel %vm170_vm3, %v602_v13, %v601_v19  ;;  %v610_v3 = vsel %vm609_vm14, %v607_v5, %v608_v9  ;;  %v611_v4 = vsel %vm609_vm14, %v608_v9, %v607_v5 }
 0x2bb   :  { %v1405_v25 = vpack.c.bf16 %v603_v20, %v604_v21  ;;  %v1408_v26 = vpack.c.bf16 %v610_v3, %v611_v4  ;;  %v1739_v20 = vld [vmem:[#allocation12] sm:$0xff]   ;;  %v1740_v21 = vld [vmem:[#allocation12 + $0x8] sm:$0xff]  }
 0x2bc   :  { %v1743_v3 = vld [vmem:[#allocation12 + $0x20] sm:$0xff]   ;;  %v1744_v4 = vld [vmem:[#allocation12 + $0x28] sm:$0xff]  }
 0x2bd   :  { %1406 = vmatprep.mubr.msk.bf16.mxu1 %vm2155_vm11, %v1405_v25  ;;  %1589 = vmatmul.mubr.msk.bf16.vlgmr.msra.gmra.mrb[8].mxu0 %vm2197_vm15, %v1408_v26 }
 0x2be   :  { %853 = vmatmul.mubr.bf16.vlgmr.msra.gmra.mrb[4].mxu1 %v618_v28  ;;  %1593 = vmatpush3.bf16.msra.mxu0 %v1716_v23  ;;  %v1746_v23 = vld [vmem:[#allocation12 + $0x38] sm:$0xff]   ;;  %v1410_v28 = vld [vmem:[%s2269_s8] ss:$0 sm:$0xff] }
 0x2bf   :  { %1513 = vmatpush3.bf16.msra.mxu1 %v1717_v27  ;;  %1594 = vmatprep.subr.bf16.mxu0 %v1924_v33 }
 0x2c0   :  { %1514 = vmatprep.subr.bf16.mxu1 %v1718_v29  ;;  %1608 = vmatprep.mubr.msk.bf16.mxu0 %vm1925_vm9, %v1924_v33 }
 0x2c2   :  { %1595 = vmatpush3.bf16.msra.mxu0 %v1719_v30 }
 0x2c3   :  { %1515 = vmatpush3.bf16.msra.mxu1 %v1720_v31  ;;  %1596 = vmatprep.subr.bf16.mxu0 %v1924_v33 }
 0x2c4   :  { %1516 = vmatprep.subr.bf16.mxu1 %v1721_v32 }
 0x2c6   :  { %1597 = vmatpush3.bf16.msra.mxu0 %v1722_v34 }
 0x2c7   :  { %1517 = vmatpush3.bf16.msra.mxu1 %v1723_v35  ;;  %1598 = vmatprep.subr.bf16.mxu0 %v1924_v33 }
 0x2c8   :  { %1518 = vmatprep.subr.bf16.mxu1 %v1724_v36 }
 0x2ca   :  { %1599 = vmatpush3.bf16.msra.mxu0 %v1725_v37 }
 0x2cb   :  { %1600 = vmatprep.subr.bf16.mxu0 %v1924_v33  ;;  %1519 = vmatpush3.bf16.msra.mxu1 %v1726_v38 }
 0x2cc   :  { %1520 = vmatprep.subr.bf16.mxu1 %v1727_v39 }
 0x2ce   :  { %1601 = vmatpush3.bf16.msra.mxu0 %v1728_v40 }
 0x2cf   :  { %1521 = vmatpush3.bf16.msra.mxu1 %v1729_v41  ;;  %1602 = vmatprep.subr.bf16.mxu0 %v1924_v33 }
 0x2d0   :  { %1522 = vmatprep.subr.bf16.mxu1 %v1730_v42 }
 0x2d2   :  { %1603 = vmatpush3.bf16.msra.mxu0 %v1731_v43 }
 0x2d3   :  { %1523 = vmatpush3.bf16.msra.mxu1 %v1732_v44  ;;  %1604 = vmatprep.subr.bf16.mxu0 %v1924_v33 }
 0x2d4   :  { %1524 = vmatprep.subr.bf16.mxu1 %v1733_v45 }
 0x2d6   :  { %1605 = vmatpush3.bf16.msra.mxu0 %v1734_v46 }
 0x2d7   :  { %1525 = vmatpush3.bf16.msra.mxu1 %v1735_v47  ;;  %1606 = vmatprep.subr.bf16.mxu0 %v1924_v33 }
 0x2d8   :  { %1526 = vmatprep.subr.bf16.mxu1 %v1736_v48  ;;  %v1441_v48 = vld [vmem:[%s2271_s10] ss:$0 sm:$0xff] }
 0x2da   :  { %1607 = vmatpush3.bf16.msra.mxu0 %v1737_v49 }
 0x2db   :  { %1527 = vmatpush3.bf16.msra.mxu1 %v1738_v50 }
 0x2dc   :  { %1612 = vmatprep.subr.bf16.mxu1 %v1924_v33 }
 0x390   :  { %v895_v51 = vpop.f32.mrb[8].mxu0 }
 0x391   :  { %v1497_v52 = vpop.f32.mrb[4].mxu1  ;;  %v1590_v53 = vpop.f32.mrb[9].mxu0 }
 0x392   :  { %v1498_v55 = vpop.f32.mrb[5].mxu1  ;;  %v898_v56 = vpop.f32.mrb[10].mxu0 }
 0x393   :  { %v1499_v57 = vadd.f32 %v1498_v55, %v1497_v52  ;;  %v1500_v58 = vpop.f32.mrb[6].mxu1  ;;  %v1591_v59 = vpop.f32.mrb[11].mxu0 }
 0x394   :  { %v1501_v60 = vpop.f32.mrb[7].mxu1 }
 0x395   :  { %v855_v61 = vadd.f32 %v1499_v57, %v1379_v54  ;;  %v1502_v62 = vadd.f32 %v1501_v60, %v1500_v58 }
 0x397   :  { %v896_v63 = vadd.f32 %v895_v51, %v855_v61  ;;  %v858_v0 = vadd.f32 %v1502_v62, %v1379_v54 }
 0x399   :  { %v902_v2 = vmax.f32 %v896_v63, 0.0  ;;  %v899_v6 = vadd.f32 %v898_v56, %v858_v0 }
 0x39b   :  { %v903_v7 = vmax.f32 %v899_v6, 0.0  ;;  %v904_v8 = vrot.slane %v902_v2, 6  ;;  %v910_v10 = vrot.slane %v902_v2, 4 }
 0x39d   :  { %v905_v11 = vrot.slane %v903_v7, 6  ;;  %v911_v12 = vrot.slane %v903_v7, 4  ;;  %v916_v14 = vpack.c.bf16 %v903_v7, %v902_v2 }
 0x39f   :  { %v906_v15 = vsel %vm170_vm3, %v904_v8, %v905_v11  ;;  %v907_v17 = vsel %vm170_vm3, %v905_v11, %v904_v8  ;;  %v912_v5 = vsel %vm609_vm14, %v910_v10, %v911_v12  ;;  %v913_v9 = vsel %vm609_vm14, %v911_v12, %v910_v10 }
 0x3a0   :  { %v1436_v19 = vpack.c.bf16 %v906_v15, %v907_v17  ;;  %v1439_v13 = vpack.c.bf16 %v912_v5, %v913_v9 }
 0x3a2   :  { %1437 = vmatprep.mubr.msk.bf16.mxu1 %vm2155_vm11, %v1436_v19  ;;  %1609 = vmatmul.mubr.msk.bf16.vlgmr.msra.gmra.mrb[12].mxu0 %vm2197_vm15, %v1439_v13 }
 0x3a3   :  { %1151 = vmatmul.mubr.bf16.vlgmr.msra.gmra.mrb[8].mxu1 %v916_v14 }
 0x3a4   :  { %1613 = vmatpush3.bf16.msra.mxu1 %v1739_v20  ;;  %1628 = vmatprep.mubr.msk.bf16.mxu1 %vm1925_vm9, %v1924_v33 }
 0x3a5   :  { %1614 = vmatprep.subr.bf16.mxu1 %v1924_v33 }
 0x3a8   :  { %1615 = vmatpush3.bf16.msra.mxu1 %v1740_v21 }
 0x3a9   :  { %1616 = vmatprep.subr.bf16.mxu1 %v1924_v33 }
 0x3ac   :  { %1617 = vmatpush3.bf16.msra.mxu1 %v1741_v1 }
 0x3ad   :  { %1618 = vmatprep.subr.bf16.mxu1 %v1924_v33 }
 0x3b0   :  { %1619 = vmatpush3.bf16.msra.mxu1 %v1742_v24 }
 0x3b1   :  { %1620 = vmatprep.subr.bf16.mxu1 %v1924_v33 }
 0x3b4   :  { %1621 = vmatpush3.bf16.msra.mxu1 %v1743_v3 }
 0x3b5   :  { %1622 = vmatprep.subr.bf16.mxu1 %v1924_v33 }
 0x3b8   :  { %1623 = vmatpush3.bf16.msra.mxu1 %v1744_v4 }
 0x3b9   :  { %1624 = vmatprep.subr.bf16.mxu1 %v1924_v33 }
 0x3bc   :  { %1625 = vmatpush3.bf16.msra.mxu1 %v1745_v22 }
 0x3bd   :  { %1626 = vmatprep.subr.bf16.mxu1 %v1924_v33 }
 0x3c0   :  { %1627 = vmatpush3.bf16.msra.mxu1 %v1746_v23 }
 0x475   :  { %v1193_v25 = vpop.f32.mrb[12].mxu0 }
 0x476   :  { %v1528_v26 = vpop.f32.mrb[8].mxu1  ;;  %v1610_v27 = vpop.f32.mrb[13].mxu0 }
 0x477   :  { %v1529_v29 = vpop.f32.mrb[9].mxu1  ;;  %v1196_v30 = vpop.f32.mrb[14].mxu0 }
 0x478   :  { %v1530_v31 = vadd.f32 %v1529_v29, %v1528_v26  ;;  %v1531_v32 = vpop.f32.mrb[10].mxu1  ;;  %v1611_v34 = vpop.f32.mrb[15].mxu0 }
 0x479   :  { %v1532_v35 = vpop.f32.mrb[11].mxu1 }
 0x47a   :  { %v1153_v36 = vadd.f32 %v1530_v31, %v1410_v28  ;;  %v1533_v37 = vadd.f32 %v1532_v35, %v1531_v32 }
 0x47c   :  { %v1194_v38 = vadd.f32 %v1193_v25, %v1153_v36  ;;  %v1156_v39 = vadd.f32 %v1533_v37, %v1410_v28 }
 0x47e   :  { %v1200_v40 = vmax.f32 %v1194_v38, 0.0  ;;  %v1197_v33 = vadd.f32 %v1196_v30, %v1156_v39 }
 0x480   :  { %v1202_v41 = vadd.f32 %v1200_v40, %v2178_v16  ;;  %v1201_v42 = vmax.f32 %v1197_v33, 0.0 }
 0x482   :  { %v1204_v43 = vmax.f32 %v1202_v41, 0.0  ;;  %v1203_v44 = vadd.f32 %v1201_v42, %v2180_v18 }
 0x484   :  { %1206 = vst [vmem:[#allocation2] sm:$0xff] %v1204_v43  ;;  %v1205_v45 = vmax.f32 %v1203_v44, 0.0 }
 0x486   :  { %1207 = vst [vmem:[#allocation2 + $0x8] sm:$0xff] %v1205_v45 }
 0x48d   :  { %v1209_v46 = vld [vmem:[#allocation2 + $0x7] ss:$8 sm:$0x3] }
 0x48e   :  { %v1210_v47 = vpack.c.bf16 %v1209_v46, %v1209_v46 }
 0x490   :  { %1629 = vmatmul.mubr.bf16.vlgmr.msra.gmra.mrb[12].mxu1 %v1210_v47 }
 0x563   :  { %v1316_v49 = vpop.f32.mrb[12].mxu1 }
 0x564   :  { %v1317_v50 = vadd.f32 %v1441_v48, %v1316_v49  ;;  %v1630_v51 = vpop.f32.mrb[13].mxu1 }
 0x565   :  { %v1319_v16 = vpop.f32.mrb[14].mxu1 }
 0x566   :  { %1322 = vst [vmem:[#allocation14] sm:$0x3] %v1317_v50  ;;  %v1631_v52 = vpop.f32.mrb[15].mxu1 }
 0x567   :  { %1890 = shalt.err (!%p1887_p10)
}
 0x568   :  { %s1891_s10 = scalar_lea.hbm %s2272_s11, 32 }
 0x569   :  { %p1892_p11 = scmp.ne.s32.totalorder %s2272_s11, %s1891_s10  ;;  %p1895_p12 = scmp.lt.u32.totalorder %s1891_s10, %s2272_s11 }
 0x56b   :  { %p1897_p13 = pnand %p1895_p12, %p1892_p11 }
 0x56d   :  { %1900 = shalt.err (!%p1897_p13)
}
 0x56e   :  { %1332 = dma.vmem_to_hbm [thread:$0]  %s1330_s21, 32, %s2272_s11, [#allocation5]  }
 0x56f   :  { %1909 = dma.done.wait [#allocation5], 32  }
 0x570   :  { %1910 = vsyncadd [#allocation5], 4294967264 }
 0x571   :  { %1336 = vsyncpa [#allocation4], 1 }
 0x572   :  { %1337 = vsyncpa [#allocation7], 1 }
 0x573   :  { %1338 = vsyncpa [#allocation10], 1 }
 0x574   :  { %1339 = vsyncpa [#allocation13], 1 }
 0x575   :  { %1340 = vsyncpa [#allocation5], 1 }

</bundles_post_ra>
